<compile_context>
chip_gen: v5e
topology: v5e:2x2
jax: 0.10.0
libtpu: 0.0.40
codegen_flags: <defaults>
</compile_context>

<pallas_src>
import math

import jax
import jax.numpy as jnp
from jax.experimental import pallas as pl
from jax.experimental.pallas import tpu as pltpu


# ---------------------------------------------------------------------------
# Kernel: two broadcast FMAs (VPU) + single sin, lane-dense (TM, D) store
# ---------------------------------------------------------------------------
def _theory_grid_kernel(coords_ref, params_ref, out_ref):
    # coords_ref: (TM, 2)  -- tile of flattened coords
    # params_ref: (3, D)   -- rows: [ux*freq, uy*freq, phase]
    # out_ref   : (TM, D)
    p = params_ref[...]
    x = coords_ref[:, 0:1]  # (TM, 1)
    y = coords_ref[:, 1:2]  # (TM, 1)
    arg = x * p[0:1, :] + y * p[1:2, :] + p[2:3, :]  # (TM, D)
    out_ref[...] = jnp.sin(arg).astype(out_ref.dtype)


# ---------------------------------------------------------------------------
# Module wrapper
# ---------------------------------------------------------------------------
class TheoryGridCellSpatialRelationEncoder:
    def __init__(
        self,
        spa_embed_dim,
        coord_dim=2,
        frequency_num=16,
        max_radius=10000,
        min_radius=1000,
        freq_init="geometric",
        ffn=None,
    ):
        assert coord_dim == 2
        assert freq_init == "geometric"  # deterministic init only
        self.spa_embed_dim = spa_embed_dim
        self.coord_dim = coord_dim
        self.frequency_num = frequency_num
        self.max_radius = max_radius
        self.min_radius = min_radius
        self.input_embed_dim = 6 * frequency_num
        self.ffn = ffn  # TODO(synk): ffn=None in this config; no FFN kernel emitted.

        # freq_list (geometric), identical to _cal_freq_list('geometric', ...)
        log_timescale_increment = math.log(float(max_radius) / float(min_radius)) / (
            frequency_num * 1.0 - 1
        )
        timescales = min_radius * jnp.exp(
            jnp.arange(frequency_num, dtype=jnp.float32) * log_timescale_increment
        )
        self.freq_list = (1.0 / timescales).astype(jnp.float32)  # (F,)

        D = self.input_embed_dim

        # unit vectors as columns of a (2, 3) matrix
        u = jnp.array(
            [
                [1.0, -0.5, -0.5],
                [0.0, math.sqrt(3) / 2.0, -math.sqrt(3) / 2.0],
            ],
            dtype=jnp.float32,
        )  # (2, 3)
        # per-output-column unit vectors: pattern [u1,u1,u2,u2,u3,u3] per freq
        per6 = u[:, jnp.array([0, 0, 1, 1, 2, 2])]          # (2, 6)
        uvec6 = jnp.tile(per6, (1, frequency_num))           # (2, D)
        freq_row = jnp.repeat(self.freq_list, 6)[None, :]    # (1, D)
        scaled = uvec6 * freq_row                            # (2, D)  freq folded in
        # phase: 0 for even columns (sin), pi/2 for odd columns (cos)
        col = jnp.arange(D)
        phase = jnp.where(col % 2 == 1, jnp.float32(math.pi / 2.0), 0.0)[None, :]
        # params kept at the true width D -- no lane padding.
        self.params = jnp.concatenate([scaled, phase], axis=0).astype(jnp.float32)

    def __call__(self, coords):
        return self.forward(coords)

    def forward(self, coords, *, tm_max=4096, min_steps=8):
        # coords: (B, N, 2) float32
        B, N, C = coords.shape
        assert C == 2
        D = self.input_embed_dim
        M = B * N
        flat = coords.reshape(M, 2).astype(jnp.float32)  # free metadata reshape

        # Row tile: as large as useful, multiple of 8, but keep >= min_steps
        # grid steps so v7x's two TensorCores both get work.
        tm = min(tm_max, max(8, ((pl.cdiv(M, min_steps) + 7) // 8) * 8))
        grid = (pl.cdiv(M, tm),)  # ragged last block handled by Pallas clamping

        # TODO(synk): if the downstream consumer accepts bf16, switch the
        # out_shape dtype to bfloat16 to halve writeback bytes on v5e.
        out = pl.pallas_call(
            _theory_grid_kernel,
            out_shape=jax.ShapeDtypeStruct((M, D), jnp.float32),
            grid_spec=pltpu.PrefetchScalarGridSpec(
                num_scalar_prefetch=0,
                grid=grid,
                in_specs=[
                    pl.BlockSpec((tm, 2), lambda i: (i, 0)),
                    # constant index_map -> block fetched once, not re-DMA'd
                    pl.BlockSpec((3, D), lambda i: (0, 0)),
                ],
                out_specs=pl.BlockSpec((tm, D), lambda i: (i, 0)),
            ),
            compiler_params=pltpu.CompilerParams(
                dimension_semantics=("parallel",)
            ),
        )(flat, self.params)

        out = out.reshape(B, N, D)  # free metadata reshape
        if self.ffn is not None:
            return self.ffn(out)
        return out


# ---------------------------------------------------------------------------
# Pure-JAX reference mirroring the PyTorch forward (for verification)
# ---------------------------------------------------------------------------
def _reference(coords, frequency_num, freq_list):
    B, N, _ = coords.shape
    u1 = jnp.array([1.0, 0.0], dtype=jnp.float32)
    u2 = jnp.array([-0.5, math.sqrt(3) / 2.0], dtype=jnp.float32)
    u3 = jnp.array([-0.5, -math.sqrt(3) / 2.0], dtype=jnp.float32)
    a1 = coords @ u1
    a2 = coords @ u2
    a3 = coords @ u3
    angle = jnp.stack([a1, a1, a2, a2, a3, a3], axis=-1)  # (B, N, 6)
    angle = angle[:, :, None, :]                          # (B, N, 1, 6)
    angle = jnp.tile(angle, (1, 1, frequency_num, 1))     # (B, N, F, 6)
    freq_mat = jnp.repeat(freq_list[:, None], 6, axis=1)  # (F, 6)
    angle = angle * freq_mat
    spr = angle.reshape(B, N, -1)
    idx = jnp.arange(spr.shape[-1])
    return jnp.where(idx % 2 == 0, jnp.sin(spr), jnp.cos(spr))


if __name__ == "__main__":
    key = jax.random.PRNGKey(0)
    frequency_num = 16
    enc = TheoryGridCellSpatialRelationEncoder(
        spa_embed_dim=32, frequency_num=frequency_num
    )

    # Case 1: small shape consistent with the module (batch=2, seq=8).
    # Case 2: multi-tile grid + ragged last block + rows not a multiple of 8.
    for (B, N) in [(2, 8), (3, 37)]:
        key, sub = jax.random.split(key)
        coords = (
            jax.random.uniform(
                sub, (B, N, 2), dtype=jnp.float32, minval=-1.0, maxval=1.0
            )
            * 5000.0
        )
        out = jax.block_until_ready(enc(coords))
        ref = _reference(coords, frequency_num, enc.freq_list)
        assert out.shape == (B, N, 6 * frequency_num), out.shape
        assert jnp.allclose(out, ref, atol=1e-4, rtol=1e-4), float(
            jnp.max(jnp.abs(out - ref))
        )

    print("KERNEL_OK")
</pallas_src>

<mosaic_0001>
module attributes {stable_mosaic.version = 11 : i64} {
  func.func @_theory_grid_kernel(%arg0: i32, %arg1: memref<8x2xf32, #tpu.memory_space<vmem>>, %arg2: memref<3x96xf32, #tpu.memory_space<vmem>>, %arg3: memref<8x96xf32, #tpu.memory_space<vmem>>) attributes {dimension_semantics = [#tpu.dimension_semantics<parallel>], iteration_bounds = array<i64: 2>, scalar_prefetch = 0 : i64, scratch_operands = 0 : i64, tpu.core_type = #tpu.core_type<tc>, window_params = [{transform_indices = @transform_0, window_bounds = array<i64: 8, 2>}, {pipeline_mode = #tpu.pipeline_mode<synchronous>, transform_indices = @transform_1, window_bounds = array<i64: 3, 96>}, {transform_indices = @transform_2, window_bounds = array<i64: 8, 96>}]} {
    %c0 = arith.constant 0 : index
    %c0_0 = arith.constant 0 : index
    %0 = vector.load %arg2[%c0, %c0_0] : memref<3x96xf32, #tpu.memory_space<vmem>>, vector<3x96xf32>
    %c0_1 = arith.constant 0 : index
    %c0_2 = arith.constant 0 : index
    %1 = vector.load %arg1[%c0_1, %c0_2] : memref<8x2xf32, #tpu.memory_space<vmem>>, vector<8x1xf32>
    %c0_3 = arith.constant 0 : index
    %c1 = arith.constant 1 : index
    %2 = vector.load %arg1[%c0_3, %c1] : memref<8x2xf32, #tpu.memory_space<vmem>>, vector<8x1xf32>
    %3 = vector.extract_strided_slice %0 {offsets = [0, 0], sizes = [1, 96], strides = [1, 1]} : vector<3x96xf32> to vector<1x96xf32>
    %4 = vector.broadcast %1 : vector<8x1xf32> to vector<8x96xf32>
    %5 = vector.broadcast %3 : vector<1x96xf32> to vector<8x96xf32>
    %6 = arith.mulf %4, %5 : vector<8x96xf32>
    %7 = vector.extract_strided_slice %0 {offsets = [1, 0], sizes = [1, 96], strides = [1, 1]} : vector<3x96xf32> to vector<1x96xf32>
    %8 = vector.broadcast %2 : vector<8x1xf32> to vector<8x96xf32>
    %9 = vector.broadcast %7 : vector<1x96xf32> to vector<8x96xf32>
    %10 = arith.mulf %8, %9 : vector<8x96xf32>
    %11 = arith.addf %6, %10 : vector<8x96xf32>
    %12 = vector.extract_strided_slice %0 {offsets = [2, 0], sizes = [1, 96], strides = [1, 1]} : vector<3x96xf32> to vector<1x96xf32>
    %13 = vector.broadcast %12 : vector<1x96xf32> to vector<8x96xf32>
    %14 = arith.addf %11, %13 : vector<8x96xf32>
    %15 = math.sin %14 : vector<8x96xf32>
    %c0_4 = arith.constant 0 : index
    %c0_5 = arith.constant 0 : index
    %16 = vector.load %arg3[%c0_4, %c0_5] : memref<8x96xf32, #tpu.memory_space<vmem>>, vector<8x96xf32>
    tpu.vector_store %arg3[%c0_4, %c0_5], %15 {strides = array<i32>} : memref<8x96xf32, #tpu.memory_space<vmem>>, vector<8x96xf32>,
    return
  }
  func.func @transform_0(%arg0: i32) -> (i32, i32) {
    %c0_i32 = arith.constant 0 : i32
    %c0_i32_0 = arith.constant 0 : i32
    return %arg0, %c0_i32 : i32, i32
  }
  func.func @transform_1(%arg0: i32) -> (i32, i32) {
    %c0_i32 = arith.constant 0 : i32
    %c0_i32_0 = arith.constant 0 : i32
    %c0_i32_1 = arith.constant 0 : i32
    return %c0_i32, %c0_i32_0 : i32, i32
  }
  func.func @transform_2(%arg0: i32) -> (i32, i32) {
    %c0_i32 = arith.constant 0 : i32
    %c0_i32_0 = arith.constant 0 : i32
    return %arg0, %c0_i32 : i32, i32
  }
}

</mosaic_0001>

<bundles_post_ra>
// kernel: tpu_custom_call.1
= control target key start
LH: loop header
LB: loop body
LE: loop exit
PB: predicated region body
PF: predicated region fallthrough
CT: control target
= control target key end

     0   :  { %7 = vsyncpa [#allocation3], 0  ;;  %s692_s0 = inlined_call_operand.vmem [shape: f32[16,2], index: 0, kind: input, shape index: {}]   ;;  %s693_s1 = inlined_call_operand.vmem [shape: f32[3,96], index: 1, kind: input, shape index: {}]   ;;  %s694_s2 = inlined_call_operand.hbm [shape: f32[16,96], index: 2, kind: output, shape index: {}]  }
   0x1   :  { %9 = vsyncpa [#allocation3 + $0x1], 0  ;;  %s538_s9 = smov 0   ;;  %s540_s10 = smov 0  }
   0x2   :  { %s542_s11 = smov 0   ;;  %s544_s12 = smov 0  }
   0x3 LB: > { %s559_s13 = sadd.s32 4294967295, %s513_s12   ;;  %s389_s14 = sadd.s32 4294967294, %s513_s12   ;;  %s513_s12 = sphi %s544_s12, %s702_s12   ;;  %s509_s11 = sphi %s542_s11, %s701_s11   ;;  %s505_s10 = sphi %s540_s10, %s700_s10   ;;  %s501_s9 = sphi %s538_s9, %s699_s9  }
   0x4   : > { %s563_s15 = sadd.s32 1, %s513_s12   ;;  %s69_s16 = sadd.s32 1, %s509_s11 }
   0x5   : > { %s66_s17 = ssub.s32 %s513_s12, %s563_s15  ;;  %p79_p0 = scmp.ne.s32.totalorder %s509_s11, %s505_s10 }
   0x6   : > { %p67_p1 = scmp.eq.s32.totalorder %s66_s17, 0  ;;  %p80_p2 = scmp.eq.s32.totalorder %s559_s13, 1 }
   0x7   : > { %p85_p3 = scmp.ne.s32.totalorder %s505_s10, %s501_s9  ;;  %p86_p4 = scmp.eq.s32.totalorder %s389_s14, 1 }
   0x8   : > { %s574_s18 = scalar_select %p67_p1, %s509_s11, %s69_s16  }
   0x9   : > { %p576_p5 = por %p80_p2, %p79_p0  ;;  %p580_p6 = por %p86_p4, %p85_p3 }
   0xa   : > { %p392_p7 = scmp.ge.s32.totalorder %s513_s12, 1  ;;  %p114_p8 = scmp.lt.s32.totalorder %s513_s12, 3 }
   0xc   : > { %p115_p9 = pnand %p392_p7, %p114_p8 }
   0xd   : > { %p135_p10 = scmp.lt.s32.totalorder (!%p115_p9), %s559_s13, 1  ;;  %s132_s28 = sand.u32 (!%p115_p9), 1, %s505_s10  }
   0xe   : > { %118 = sbr.rel (%p115_p9) target bundleno = 253 (0xfd), region = 28  ;;  %s393_s29 = sshll.u32 (!%p115_p9), %s132_s28, 3 }
   0xf   : > { %s399_s30 = sshll.u32 (!%p115_p9), %s559_s13, 3  ;;  %s134_s6 = scalar_lea.vmem (!%p115_p9), [#allocation2], %s393_s29 }
  0x10   : > { %s325_s5 = scalar_lea.hbm (!%p115_p9), %s694_s2, %s399_s30  ;;  %s659_s7 = sshll.u32 (!%p115_p9), %s134_s6, 4  ;;  %s328_s7 = int_to_ptr.vmem [resolvable:$true] %s659_s7 }
  0x11   : > { %s329_s8 = sshll.u32 (!%p115_p9), %s325_s5, 4  ;;  %s330_s8 = int_to_ptr.hbm [resolvable:$true] %s329_s8 }
  0x12   : > { %s465_s14 = sshra.s32 (!%p115_p9), %s330_s8, 4  ;;  %s466_s14 = int_to_ptr.hbm [resolvable:$true] %s465_s14 }
  0x13   : > { %v515_v0 = vmov 0   ;;  %s136_s21 = scalar_select %p135_p10, %s559_s13, 1  ;;  %v516_v2 = vmov 1   ;;  %v139_v4 = vld [vmem:[%s693_s1] sm:$0x7] }
  0x14   : > { %449 = vset.pattern.permute.xlu0 %v515_v0  ;;  %v146_v5 = vperm.slane %v139_v4, 0  ;;  %v152_v6 = vperm.slane %v139_v4, 1  ;;  %v155_v9 = vperm.slane %v139_v4, 2  ;;  %v517_v24 = vmov 683565275   ;;  %s315_s13 = scalar_lea.sflag [#allocation3], %s132_s28  ;;  %p472_p0 = scmp.lt.s32.totalorder %s466_s14, %s694_s2 }
  0x15   : > { %s394_s22 = sshll.u32 %s136_s21, 3  ;;  %v518_v26 = vmov 2475754826   ;;  %v519_v28 = vmov 2131351028   ;;  %s467_s16 = scalar_lea.hbm %s466_s14, 8 }
  0x16   : > { %s138_s25 = scalar_lea.vmem %s692_s0, %s394_s22  ;;  %v520_v30 = vmov 2102212464   ;;  %v521_v35 = vmov 920167782   ;;  %v522_v38 = vmov 1326507024   ;;  %p468_p11 = scmp.ne.s32.totalorder %s466_s14, %s467_s16 }
  0x17   : > { %v140_v1 = vld [vmem:[%s138_s25] sm:$0xff]  ;;  %s471_s22 = scalar_lea.hbm %s694_s2, 16 }
  0x18   : > { %143 = vperm.xlu0 %449, %v140_v1   ;;  %p469_p12 = pnand %p468_p11, %p576_p5  ;;  %p473_p1 = scmp.lt.s32.totalorder %s471_s22, %s467_s16 }
  0x1a   : > { %p470_p13 = pneg %p469_p12  ;;  %p474_p2 = por %p473_p1, %p472_p0 }
  0x1c   : > { %p475_p3 = pnand %p474_p2, %p470_p13 }
  0x20   : > { %450 = vset.pattern.permute.xlu0 %v516_v2 }
  0x21   : > { %149 = vperm.xlu0 %450, %v140_v1  }
  0x8a   : > { %v144_v3 = vpop.permute.xlu0 %143 }
  0x8b   : > { %v147_v8 = vmul.f32 %v146_v5, %v144_v3 }
  0x93   : > { %v150_v7 = vpop.permute.xlu0 %149 }
  0x94   : > { %v153_v10 = vmul.f32 %v152_v6, %v150_v7 }
  0x96   : > { %v154_v11 = vadd.f32 %v153_v10, %v147_v8 }
  0x98   : > { %v595_v12 = vadd.f32 %v155_v9, %v154_v11 }
  0x9a   : > { %v160_v13 = vand.u32 2139095040, %v595_v12  ;;  %v157_v15 = vand.u32 2147483647, %v595_v12  ;;  %vm159_vm12 = vcmp.lt.s32.totalorder %v595_v12, 0 }
  0x9c   : > { %v161_v14 = vshrl.u32 %v160_v13, 23  ;;  %v164_v18 = vand.u32 8388607, %v157_v15  ;;  %vm643_vm13 = vcmp.le.f32.partialorder %v157_v15, 0.7853982 }
  0x9e   : > { %v395_v16 = vadd.s32 4294967169, %v161_v14  ;;  %v165_v21 = vor.u32 8388608, %v164_v18 }
  0xa0   : > { %v167_v17 = vadd.s32 1, %v395_v16  ;;  %v603_v40 = vshll.u32 %v165_v21, 8 }
  0xa2   : > { %vm168_vm0 = vcmp.gt.s32.totalorder %v167_v17, 0  ;;  %v206_v52 = vand.u32 65535, %v603_v40  ;;  %v207_v54 = vshrl.u32 %v603_v40, 16 }
  0xa3   : > { %v169_v19 = vsel %vm168_vm0, %v167_v17, 0 }
  0xa4   : > { %v171_v20 = vand.u32 31, %v169_v19  ;;  %v601_v22 = vshrl.u32 %v169_v19, 5 }
  0xa6   : > { %v172_v23 = vsub.s32 32, %v171_v20  ;;  %v174_v25 = vshll.u32 %v517_v24, %v171_v20  ;;  %v177_v27 = vshll.u32 %v518_v26, %v171_v20  ;;  %v180_v29 = vshll.u32 %v519_v28, %v171_v20 }
  0xa7   : > { %v183_v31 = vshll.u32 %v520_v30, %v171_v20  ;;  %v186_v37 = vshll.u32 %v521_v35, %v171_v20  ;;  %vm189_vm1 = vcmp.lt.s32.totalorder %v601_v22, 1  ;;  %vm192_vm2 = vcmp.lt.s32.totalorder %v601_v22, 4 }
  0xa8   : > { %v175_v32 = vshrl.u32 %v518_v26, %v172_v23  ;;  %v178_v33 = vshrl.u32 %v519_v28, %v172_v23  ;;  %v181_v34 = vshrl.u32 %v520_v30, %v172_v23  ;;  %v184_v36 = vshrl.u32 %v521_v35, %v172_v23 }
  0xa9   : > { %v187_v39 = vshrl.u32 %v522_v38, %v172_v23  ;;  %vm191_vm3 = vcmp.lt.s32.totalorder %v601_v22, 3  ;;  %vm190_vm4 = vcmp.lt.s32.totalorder %v601_v22, 2  ;;  %v173_v17 = vshrl.u32 %v517_v24, %v172_v23 }
  0xaa   : > { %v176_v41 = vor.u32 %v175_v32, %v174_v25  ;;  %v179_v42 = vor.u32 %v178_v33, %v177_v27  ;;  %v182_v43 = vor.u32 %v181_v34, %v180_v29  ;;  %v185_v44 = vor.u32 %v184_v36, %v183_v31 }
  0xab   : > { %v188_v45 = vor.u32 %v187_v39, %v186_v37 }
  0xac   : > { %v197_v46 = vsel %vm189_vm1, %v176_v41, %v179_v42  ;;  %v198_v47 = vsel %vm192_vm2, %v185_v44, 920167782  ;;  %v201_v48 = vsel %vm189_vm1, %v179_v42, %v182_v43  ;;  %v194_v13 = vsel %vm192_vm2, %v182_v43, 2102212464 }
  0xad   : > { %v199_v49 = vsel %vm191_vm3, %v182_v43, %v198_v47  ;;  %v202_v50 = vsel %vm192_vm2, %v188_v45, 1326507024  ;;  %v193_v26 = vsel %vm189_vm1, %v173_v17, %v176_v41  ;;  %v195_v27 = vsel %vm191_vm3, %v179_v42, %v194_v13 }
  0xae   : > { %v203_v51 = vsel %vm191_vm3, %v185_v44, %v202_v50  ;;  %v200_v53 = vsel %vm190_vm4, %v197_v46, %v199_v49  ;;  %v196_v24 = vsel %vm190_vm4, %v193_v26, %v195_v27  ;;  %vm312_vm1 = vcmask 785408  }
  0xaf   : > { %v204_v55 = vsel %vm190_vm4, %v201_v48, %v203_v51  ;;  %v230_v56 = vand.u32 65535, %v200_v53  ;;  %v231_v57 = vshrl.u32 %v200_v53, 16  ;;  %v250_v36 = vmul.u32 %v603_v40, %v196_v24 }
  0xb0   : > { %v208_v58 = vand.u32 65535, %v204_v55  ;;  %v209_v59 = vshrl.u32 %v204_v55, 16  ;;  %vm300_vm2 = vweird.f32 %v595_v12 }
  0xb1   : > { %v233_v60 = vmul.u32 %v231_v57, %v206_v52  ;;  %v234_v61 = vmul.u32 %v230_v56, %v207_v54  ;;  %v232_v1 = vmul.u32 %v230_v56, %v206_v52  ;;  %v235_v5 = vmul.u32 %v231_v57, %v207_v54 }
  0xb2   : > { %v211_v62 = vmul.u32 %v209_v59, %v206_v52  ;;  %v212_v63 = vmul.u32 %v208_v58, %v207_v54  ;;  %v210_v3 = vmul.u32 %v208_v58, %v206_v52  ;;  %v213_v6 = vmul.u32 %v209_v59, %v207_v54 }
  0xb3   : > { %v236_v2 = vshll.u32 %v233_v60, 16  ;;  %v238_v7 = vshll.u32 %v234_v61, 16  ;;  %v237_v21 = vshrl.u32 %v233_v60, 16  ;;  %v239_v30 = vshrl.u32 %v234_v61, 16 }
  0xb4   : > { %v214_v4 = vshll.u32 %v211_v62, 16  ;;  %v216_v9 = vshll.u32 %v212_v63, 16  ;;  %v215_v28 = vshrl.u32 %v211_v62, 16  ;;  %v217_v32 = vshrl.u32 %v212_v63, 16 }
  0xb5   : > { %vm240_vm5 = vc.u32 %v232_v1, %v236_v2  ;;  %v242_v8 = vadd.s32 %v236_v2, %v232_v1 }
  0xb6   : > { %vm218_vm6 = vc.u32 %v210_v3, %v214_v4  ;;  %v220_v10 = vadd.s32 %v214_v4, %v210_v3  ;;  %v241_v11 = vsel %vm240_vm5, 1, %v515_v0 }
  0xb7   : > { %v219_v14 = vsel %vm218_vm6, 1, %v515_v0  ;;  %v243_v16 = vadd.s32 %v241_v11, %v235_v5  ;;  %vm244_vm7 = vc.u32 %v242_v8, %v238_v7 }
  0xb8   : > { %v221_v18 = vadd.s32 %v219_v14, %v213_v6  ;;  %vm222_vm8 = vc.u32 %v220_v10, %v216_v9  ;;  %v245_v19 = vsel %vm244_vm7, 1, %v515_v0 }
  0xb9   : > { %v223_v20 = vsel %vm222_vm8, 1, %v515_v0  ;;  %v247_v25 = vadd.s32 %v245_v19, %v243_v16  ;;  %v246_v0 = vadd.s32 %v242_v8, %v238_v7 }
  0xba   : > { %v225_v29 = vadd.s32 %v223_v20, %v221_v18 }
  0xbb   : > { %v248_v31 = vadd.s32 %v247_v25, %v237_v21 }
  0xbc   : > { %v226_v23 = vadd.s32 %v225_v29, %v215_v28 }
  0xbd   : > { %v249_v33 = vadd.s32 %v248_v31, %v239_v30 }
  0xbe   : > { %v227_v34 = vadd.s32 %v226_v23, %v217_v32 }
  0xbf   : > { %v253_v35 = vadd.s32 1, %v249_v33 }
  0xc0   : > { %vm252_vm9 = vc.u32 %v227_v34, %v246_v0  ;;  %v251_v48 = vadd.s32 %v246_v0, %v227_v34 }
  0xc1   : > { %v254_v37 = vsel %vm252_vm9, %v253_v35, %v249_v33 }
  0xc2   : > { %v255_v38 = vadd.s32 %v254_v37, %v250_v36 }
  0xc4   : > { %v256_v39 = vadd.s32 536870912, %v255_v38 }
  0xc6   : > { %v257_v41 = vshrl.u32 %v256_v39, 30 }
  0xc8   : > { %v258_v42 = vshll.u32 %v257_v41, 30  ;;  %v281_v62 = vsub.s32 4, %v257_v41 }
  0xca   : > { %v259_v43 = vsub.s32 %v255_v38, %v258_v42  ;;  %v282_v4 = vsel %vm159_vm12, %v281_v62, %v257_v41 }
  0xcb   : > { %v284_v15 = vsel %vm643_vm13, 0, %v282_v4 }
  0xcc   : > { %vm260_vm10 = vcmp.lt.s32.totalorder %v259_v43, 0  ;;  %v261_v44 = vsub.s32 0, %v259_v43  ;;  %v301_v11 = vadd.s32 3, %v284_v15 }
  0xce   : > { %v262_v45 = vsel %vm260_vm10, %v261_v44, %v259_v43  ;;  %v302_v18 = vand.u32 3, %v301_v11 }
  0xcf   : > { %v263_v46 = vclz %v262_v45 }
  0xd0   : > { %vm304_vm14 = vcmp.eq.s32.totalorder %v302_v18, 0  ;;  %vm307_vm15 = vcmp.eq.s32.totalorder %v302_v18, 2  ;;  %vm303_vm0 = vcmp.lt.s32.totalorder %v302_v18, 2 }
  0xd1   : > { %v396_v47 = vadd.s32 4294967294, %v263_v46 }
  0xd3   : > { %vm397_vm11 = vcmp.lt.s32.totalorder %v396_v47, 0 }
  0xd4   : > { %v266_v22 = vsel %vm397_vm11, 0, %v396_v47 }
  0xd5   : > { %v267_v49 = vsub.s32 32, %v266_v22  ;;  %v271_v50 = vsub.s32 4294967266, %v266_v22  ;;  %v268_v51 = vshll.u32 %v259_v43, %v266_v22 }
  0xd7   : > { %v269_v52 = vshrl.u32 %v251_v48, %v267_v49  ;;  %v272_v40 = vadd.s32 127, %v271_v50 }
  0xd9   : > { %v270_v53 = vor.u32 %v269_v52, %v268_v51  ;;  %v273_v54 = vshll.u32 %v272_v40, 23 }
  0xdb   : > { %v274_v55 = vor.u32 4788187, %v273_v54  ;;  %v277_v57 = vcvt.s32.f32 %v270_v53 }
  0xdd   : > { %v275_v56 = vand.u32 2147483647, %v274_v55 }
  0xdf   : > { %v278_v58 = vmul.f32 %v277_v57, %v275_v56 }
  0xe1   : > { %v279_v59 = vxor.u32 2147483648, %v278_v58 }
  0xe3   : > { %v280_v61 = vsel %vm159_vm12, %v279_v59, %v278_v58 }
  0xe4   : > { %v283_v63 = vsel %vm643_vm13, %v595_v12, %v280_v61 }
  0xe5   : > { %v285_v1 = vmul.f32 %v283_v63, %v283_v63 }
  0xe7   : > { %v286_v2 = vmul.f32 -0.001358992, %v285_v1  ;;  %v293_v3 = vmul.f32 -0.00019511016, %v285_v1 }
  0xe9   : > { %v287_v5 = vadd.f32 0.041655596, %v286_v2  ;;  %v294_v6 = vadd.f32 0.008332121, %v293_v3 }
  0xeb   : > { %v288_v7 = vmul.f32 %v287_v5, %v285_v1  ;;  %v295_v8 = vmul.f32 %v294_v6, %v285_v1 }
  0xed   : > { %v289_v9 = vadd.f32 -0.4999988, %v288_v7  ;;  %v296_v10 = vadd.f32 -0.16666654, %v295_v8 }
  0xef   : > { %v290_v13 = vmul.f32 %v289_v9, %v285_v1  ;;  %v297_v14 = vmul.f32 %v296_v10, %v285_v1 }
  0xf1   : > { %v291_v16 = vadd.f32 1.0, %v290_v13  ;;  %v298_v17 = vadd.f32 1.0, %v297_v14 }
  0xf3   : > { %v299_v19 = vmul.f32 %v298_v17, %v283_v63  ;;  %v308_v20 = vxor.u32 2147483648, %v291_v16 }
  0xf5   : > { %v305_v21 = vxor.u32 2147483648, %v299_v19  ;;  %v309_v26 = vsel %vm307_vm15, %v308_v20, %v299_v19 }
  0xf7   : > { %v306_v25 = vsel %vm304_vm14, %v291_v16, %v305_v21 }
  0xf8   : > { %v310_v27 = vsel %vm303_vm0, %v306_v25, %v309_v26 }
  0xf9   : > { %v311_v28 = vsel %vm300_vm2, nan, %v310_v27 }
  0xfa   : > { %313 = vst.msk [vmem:[%s134_s6] sm:$0xff] %vm312_vm1, %v311_v28 }
  0xfb   : > { %478 = shalt.err (!%p475_p3)
}
  0xfc   : > { %402 = dma.vmem_to_hbm [thread:$0]  (%p576_p5), %s328_s7, 128, %s330_s8, %s315_s13  }
  0xfd PF: > { %p408_p4 = scmp.ge.s32.totalorder %s513_s12, 2  ;;  %s341_s25 = sand.u32 1, %s501_s9  }
  0xfe   : > { %s342_s26 = scalar_lea.sflag [#allocation3], %s341_s25 }
  0xff   : > { %p405_p7 = pnand %p408_p4, %p580_p6 }
 0x101   : > { %p406_p8 = pneg %p405_p7 }
 0x103   : > { %496 = dma.done.wait (%p406_p8), %s342_s26, 128  }
 0x104   : > { %498 = vsyncadd (%p406_p8), %s342_s26, 4294967168  ;;  %p12_p9 = scmp.ge.s32.totalorder %s563_s15, 4   ;;  %s699_s9 = smov %s505_s10 }
 0x105   : > { %s700_s10 = smov %s509_s11  ;;  %s701_s11 = smov %s574_s18 }
 0x106   : > { %s702_s12 = smov %s563_s15  ;;  %14 = sbr.rel (!%p12_p9) target bundleno = 3 (0x3), region = 63 }
 0x10b   :  { %348 = vsyncpa [#allocation3], 1 }
 0x10c   :  { %350 = vsyncpa [#allocation3 + $0x1], 1 }

</bundles_post_ra>
